<compile_context>
chip_gen: v7x
topology: tpu7x:2x2x1
jax: 0.10.0
libtpu: 0.0.40
codegen_flags: <defaults>
</compile_context>

<pallas_src>
import functools

import jax
import jax.numpy as jnp
from jax import lax
from jax.experimental import pallas as pl
from jax.experimental.pallas import tpu as pltpu


def _infonce2_kernel(z1_ref, z2_ref, out_ref, acc_ref, diag_ref, *,
                     inv_temp: float, num_b_blocks: int, block_b: int):
    k = pl.program_id(1)
    nk = pl.num_programs(1)

    @pl.when(k == 0)
    def _init():
        acc_ref[...] = jnp.zeros_like(acc_ref)
        diag_ref[...] = jnp.zeros_like(diag_ref)

    z1_tile = z1_ref[...]            # (block_b, block_k)
    z2_tile = z2_ref[...]            # (B, block_k)

    # Partial logits for this K tile: contract last dims (no transpose),
    # f32 accumulation on the MXU.
    acc_ref[...] += lax.dot_general(
        z1_tile, z2_tile,
        dimension_numbers=(((1,), (1,)), ((), ())),
        preferred_element_type=jnp.float32)

    # Positive-pair (diagonal) partial dot products, accumulated in f32.
    if num_b_blocks == 1:
        z2_rows = z2_tile
    else:
        i = pl.program_id(0)
        start = pl.multiple_of(i * block_b, block_b)
        z2_rows = z2_ref[pl.ds(start, block_b), :]
    diag_ref[...] += jnp.sum(
        z1_tile.astype(jnp.float32) * z2_rows.astype(jnp.float32),
        axis=-1, keepdims=True)

    @pl.when(k == nk - 1)
    def _finalize():
        logits = acc_ref[...] * inv_temp                       # (block_b, B) f32
        m = jnp.max(logits, axis=-1, keepdims=True)
        lse = m + jnp.log(jnp.sum(jnp.exp(logits - m), axis=-1, keepdims=True))
        # per-row cross-entropy term: lse_row - logits[row, row]
        out_ref[...] = lse - diag_ref[...] * inv_temp


def _pick_block(dim: int, candidates) -> int:
    for c in candidates:
        if dim % c == 0:
            return c
    return dim  # fall back to the full (untiled) dimension


def infonce2_pallas(z1: jax.Array, z2: jax.Array, temperature: float = 1.0, *,
                    compute_dtype=None, block_b=None, block_k=None) -> jax.Array:
    assert z1.shape == z2.shape and z1.ndim == 3
    batch, seq, hidden = z1.shape
    n = seq * hidden

    # Glue: flatten (B, S, H) -> (B, S*H); optional narrow cast for the MXU
    # operands (done here so HBM->VMEM streaming also happens at narrow width).
    z1f = z1.reshape(batch, n)
    z2f = z2.reshape(batch, n)
    if compute_dtype is not None and z1f.dtype != jnp.dtype(compute_dtype):
        z1f = z1f.astype(compute_dtype)
        z2f = z2f.astype(compute_dtype)

    # K tile: multiple of 128 lanes, sized so double-buffered input streams stay
    # well inside the v7x 64 MiB / default-scoped VMEM budget.
    if block_k is None:
        block_k = _pick_block(n, (2048, 1024, 512, 256, 128))
    # Row tile: nb = 1 keeps z2 streamed exactly once (best for 1-TC v5e/v6e);
    # very large batches get row-tiled so the (block_b, B) accumulator stays
    # small.  On v7x, pass block_b = batch // 2 to shard rows over both cores.
    if block_b is None:
        block_b = batch if batch <= 1024 else _pick_block(
            batch, (512, 256, 128, 64, 32, 16, 8))
    assert batch % block_b == 0 and n % block_k == 0

    nb = batch // block_b
    nk = n // block_k

    kernel = functools.partial(
        _infonce2_kernel,
        inv_temp=float(1.0 / temperature),
        num_b_blocks=nb,
        block_b=block_b)

    in_item = jnp.dtype(z1f.dtype).itemsize
    stream_bytes = 2 * (block_b + batch) * block_k * in_item   # 2x double-buffered inputs
    scratch_bytes = block_b * batch * 4 + block_b * 4
    vmem_limit = int(min(max(2 * (stream_bytes + scratch_bytes) + (4 << 20),
                             32 << 20), 64 << 20))

    per_row = pl.pallas_call(
        kernel,
        out_shape=jax.ShapeDtypeStruct((batch, 1), jnp.float32),
        grid=(nb, nk),
        in_specs=[
            pl.BlockSpec((block_b, block_k), lambda i, k: (i, k)),   # z1 rows
            pl.BlockSpec((batch, block_k), lambda i, k: (0, k)),     # z2 (all cols)
        ],
        out_specs=pl.BlockSpec((block_b, 1), lambda i, k: (i, 0)),
        scratch_shapes=[
            pltpu.VMEM((block_b, batch), jnp.float32),   # logits accumulator
            pltpu.VMEM((block_b, 1), jnp.float32),       # diagonal accumulator
        ],
        compiler_params=pltpu.CompilerParams(
            dimension_semantics=("parallel", "arbitrary"),
            vmem_limit_bytes=vmem_limit),
        cost_estimate=pl.CostEstimate(
            flops=int(2.0 * batch * batch * n + 2.0 * batch * n),
            transcendentals=int(batch * batch + batch),
            bytes_accessed=int((1 + nb) * batch * n * in_item + batch * 4)),
    )(z1f, z2f)

    # F.cross_entropy default reduction: mean over the batch (tiny, done in XLA
    # so row blocks need no cross-core reduction inside the kernel).
    return jnp.mean(per_row[:, 0])


def infonce2_ref(z1, z2, temperature: float = 1.0, compute_dtype=None):
    """Pure-JAX reference mirroring the PyTorch module."""
    b = z1.shape[0]
    a = z1.reshape(b, -1)
    c = z2.reshape(b, -1)
    if compute_dtype is not None:
        a = a.astype(compute_dtype)
        c = c.astype(compute_dtype)
    logits = jnp.dot(a, c.T, preferred_element_type=jnp.float32) / temperature
    logp = jax.nn.log_softmax(logits, axis=-1)
    return -jnp.mean(jnp.diagonal(logp))


if __name__ == "__main__":
    key = jax.random.PRNGKey(0)
    k1, k2 = jax.random.split(key)

    temperature = 0.5

    # 1) Small shape, default f32 path (exact semantics of the PyTorch module).
    batch, seq, hidden = 2, 8, 32
    z1 = jax.random.normal(k1, (batch, seq, hidden), dtype=jnp.float32)
    z2 = jax.random.normal(k2, (batch, seq, hidden), dtype=jnp.float32)
    loss = infonce2_pallas(z1, z2, temperature)
    jax.block_until_ready(loss)
    ref = infonce2_ref(z1, z2, temperature)
    assert jnp.allclose(loss, ref, rtol=1e-5, atol=1e-5), (loss, ref)

    # 2) Multi-block path: row tiling (nb=2) + K tiling (nk=4).
    b2, s2, h2 = 16, 4, 128   # N = 512
    z1b = jax.random.normal(jax.random.PRNGKey(1), (b2, s2, h2), dtype=jnp.float32)
    z2b = jax.random.normal(jax.random.PRNGKey(2), (b2, s2, h2), dtype=jnp.float32)
    loss2 = infonce2_pallas(z1b, z2b, temperature, block_b=8, block_k=128)
    jax.block_until_ready(loss2)
    ref2 = infonce2_ref(z1b, z2b, temperature)
    assert jnp.allclose(loss2, ref2, rtol=1e-4, atol=1e-4), (loss2, ref2)

    # 3) bf16 MXU operands / f32 accumulation (v6e/v7x fast path), compared
    #    against a reference that applies the same bf16 cast.
    loss3 = infonce2_pallas(z1b, z2b, temperature, compute_dtype=jnp.bfloat16)
    jax.block_until_ready(loss3)
    ref3 = infonce2_ref(z1b, z2b, temperature, compute_dtype=jnp.bfloat16)
    assert jnp.allclose(loss3, ref3, rtol=5e-3, atol=5e-3), (loss3, ref3)

    print("KERNEL_OK")
</pallas_src>

<mosaic_0001>
module attributes {stable_mosaic.version = 11 : i64} {
  func.func @_infonce2_kernel(%arg0: i32, %arg1: i32, %arg2: memref<2x256xf32, #tpu.memory_space<vmem>>, %arg3: memref<2x256xf32, #tpu.memory_space<vmem>>, %arg4: memref<2x1xf32, #tpu.memory_space<vmem>>, %arg5: memref<2x2xf32, #tpu.memory_space<vmem>>, %arg6: memref<2x1xf32, #tpu.memory_space<vmem>>) attributes {dimension_semantics = [#tpu.dimension_semantics<parallel>, #tpu.dimension_semantics<arbitrary>], iteration_bounds = array<i64: 1, 1>, scalar_prefetch = 0 : i64, scratch_operands = 2 : i64, tpu.core_type = #tpu.core_type<tc>, window_params = [{transform_indices = @transform_0, window_bounds = array<i64: 2, 256>}, {transform_indices = @transform_1, window_bounds = array<i64: 2, 256>}, {transform_indices = @transform_2, window_bounds = array<i64: 2, 1>}]} {
    %c0_i32 = arith.constant 0 : i32
    %0 = arith.cmpi eq, %arg1, %c0_i32 : i32
    %1 = arith.extui %0 : i1 to i32
    %c0_i32_0 = arith.constant 0 : i32
    %2 = arith.cmpi ne, %1, %c0_i32_0 : i32
    scf.if %2 {
      %cst_15 = arith.constant 0.000000e+00 : f32
      %18 = vector.broadcast %cst_15 : f32 to vector<2x2xf32>
      %c0_16 = arith.constant 0 : index
      %c0_17 = arith.constant 0 : index
      %19 = vector.load %arg5[%c0_16, %c0_17] : memref<2x2xf32, #tpu.memory_space<vmem>>, vector<2x2xf32>
      tpu.vector_store %arg5[%c0_16, %c0_17], %18 {strides = array<i32>} : memref<2x2xf32, #tpu.memory_space<vmem>>, vector<2x2xf32>,
      %cst_18 = arith.constant 0.000000e+00 : f32
      %20 = vector.broadcast %cst_18 : f32 to vector<2x1xf32>
      %c0_19 = arith.constant 0 : index
      %c0_20 = arith.constant 0 : index
      %21 = vector.load %arg6[%c0_19, %c0_20] : memref<2x1xf32, #tpu.memory_space<vmem>>, vector<2x1xf32>
      tpu.vector_store %arg6[%c0_19, %c0_20], %20 {strides = array<i32>} : memref<2x1xf32, #tpu.memory_space<vmem>>, vector<2x1xf32>,
    } else {
    }
    %c0 = arith.constant 0 : index
    %c0_1 = arith.constant 0 : index
    %3 = vector.load %arg2[%c0, %c0_1] : memref<2x256xf32, #tpu.memory_space<vmem>>, vector<2x256xf32>
    %c0_2 = arith.constant 0 : index
    %c0_3 = arith.constant 0 : index
    %4 = vector.load %arg3[%c0_2, %c0_3] : memref<2x256xf32, #tpu.memory_space<vmem>>, vector<2x256xf32>
    %c0_4 = arith.constant 0 : index
    %c0_5 = arith.constant 0 : index
    %5 = vector.load %arg5[%c0_4, %c0_5] : memref<2x2xf32, #tpu.memory_space<vmem>>, vector<2x2xf32>
    %cst = arith.constant dense<0.000000e+00> : vector<2x2xf32>
    %6 = tpu.matmul %3, %4, %cst {dimension_numbers = #tpu.dot_dimension_numbers<[1], [1], [0], [0], [0, 0, 1, 0], [], []>} : vector<2x256xf32>, vector<2x256xf32>, vector<2x2xf32> -> vector<2x2xf32>
    %7 = arith.addf %5, %6 : vector<2x2xf32>
    %c0_6 = arith.constant 0 : index
    %c0_7 = arith.constant 0 : index
    %8 = vector.load %arg5[%c0_6, %c0_7] : memref<2x2xf32, #tpu.memory_space<vmem>>, vector<2x2xf32>
    tpu.vector_store %arg5[%c0_6, %c0_7], %7 {strides = array<i32>} : memref<2x2xf32, #tpu.memory_space<vmem>>, vector<2x2xf32>,
    %c0_8 = arith.constant 0 : index
    %c0_9 = arith.constant 0 : index
    %9 = vector.load %arg6[%c0_8, %c0_9] : memref<2x1xf32, #tpu.memory_space<vmem>>, vector<2x1xf32>
    %10 = arith.mulf %3, %4 : vector<2x256xf32>
    %cst_10 = arith.constant dense<0.000000e+00> : vector<2xf32>
    %11 = vector.multi_reduction <add>, %10, %cst_10 [1] : vector<2x256xf32> to vector<2xf32>
    %12 = vector.shape_cast %11 : vector<2xf32> to vector<2x1xf32>
    %13 = arith.addf %9, %12 : vector<2x1xf32>
    %c0_11 = arith.constant 0 : index
    %c0_12 = arith.constant 0 : index
    %14 = vector.load %arg6[%c0_11, %c0_12] : memref<2x1xf32, #tpu.memory_space<vmem>>, vector<2x1xf32>
    tpu.vector_store %arg6[%c0_11, %c0_12], %13 {strides = array<i32>} : memref<2x1xf32, #tpu.memory_space<vmem>>, vector<2x1xf32>,
    %c0_i32_13 = arith.constant 0 : i32
    %15 = arith.cmpi eq, %arg1, %c0_i32_13 : i32
    %16 = arith.extui %15 : i1 to i32
    %c0_i32_14 = arith.constant 0 : i32
    %17 = arith.cmpi ne, %16, %c0_i32_14 : i32
    scf.if %17 {
      %c0_15 = arith.constant 0 : index
      %c0_16 = arith.constant 0 : index
      %18 = vector.load %arg5[%c0_15, %c0_16] : memref<2x2xf32, #tpu.memory_space<vmem>>, vector<2x2xf32>
      %cst_17 = arith.constant 2.000000e+00 : f32
      %19 = vector.broadcast %cst_17 : f32 to vector<2x2xf32>
      %20 = arith.mulf %18, %19 : vector<2x2xf32>
      %cst_18 = arith.constant dense<0xFF800000> : vector<2xf32>
      %21 = vector.multi_reduction <maximumf>, %20, %cst_18 [1] : vector<2x2xf32> to vector<2xf32>
      %22 = vector.shape_cast %21 : vector<2xf32> to vector<2x1xf32>
      %23 = vector.broadcast %22 : vector<2x1xf32> to vector<2x2xf32>
      %24 = arith.subf %20, %23 : vector<2x2xf32>
      %25 = math.exp %24 : vector<2x2xf32>
      %cst_19 = arith.constant dense<0.000000e+00> : vector<2xf32>
      %26 = vector.multi_reduction <add>, %25, %cst_19 [1] : vector<2x2xf32> to vector<2xf32>
      %27 = vector.shape_cast %26 : vector<2xf32> to vector<2x1xf32>
      %28 = math.log %27 : vector<2x1xf32>
      %29 = arith.addf %22, %28 : vector<2x1xf32>
      %c0_20 = arith.constant 0 : index
      %c0_21 = arith.constant 0 : index
      %30 = vector.load %arg6[%c0_20, %c0_21] : memref<2x1xf32, #tpu.memory_space<vmem>>, vector<2x1xf32>
      %cst_22 = arith.constant 2.000000e+00 : f32
      %31 = vector.broadcast %cst_22 : f32 to vector<2x1xf32>
      %32 = arith.mulf %30, %31 : vector<2x1xf32>
      %33 = arith.subf %29, %32 : vector<2x1xf32>
      %c0_23 = arith.constant 0 : index
      %c0_24 = arith.constant 0 : index
      %34 = vector.load %arg4[%c0_23, %c0_24] : memref<2x1xf32, #tpu.memory_space<vmem>>, vector<2x1xf32>
      tpu.vector_store %arg4[%c0_23, %c0_24], %33 {strides = array<i32>} : memref<2x1xf32, #tpu.memory_space<vmem>>, vector<2x1xf32>,
    } else {
    }
    return
  }
  func.func @transform_0(%arg0: i32, %arg1: i32) -> (i32, i32) {
    %c0_i32 = arith.constant 0 : i32
    return %arg0, %arg1 : i32, i32
  }
  func.func @transform_1(%arg0: i32, %arg1: i32) -> (i32, i32) {
    %c0_i32 = arith.constant 0 : i32
    %c0_i32_0 = arith.constant 0 : i32
    return %c0_i32, %arg1 : i32, i32
  }
  func.func @transform_2(%arg0: i32, %arg1: i32) -> (i32, i32) {
    %c0_i32 = arith.constant 0 : i32
    %c0_i32_0 = arith.constant 0 : i32
    return %arg0, %c0_i32 : i32, i32
  }
}

</mosaic_0001>

<bundles_post_ra>
// kernel: tpu_custom_call.1
= control target key start
LH: loop header
LB: loop body
LE: loop exit
PB: predicated region body
PF: predicated region fallthrough
CT: control target
= control target key end

     0   :  { %7 = vsyncpa [#allocation5], 0  ;;  %s296_s0 = inlined_call_operand.hbm [shape: f32[2,256], index: 0, kind: input, shape index: {}]   ;;  %s297_s1 = inlined_call_operand.hbm [shape: f32[2,256], index: 1, kind: input, shape index: {}]   ;;  %s298_s2 = inlined_call_operand.vmem [shape: f32[2,1], index: 2, kind: output, shape index: {}]  }
   0x1   :  { %8 = vsyncpa [#allocation7], 0  ;;  %s246_s9 = smov [#allocation4]   ;;  %s247_s11 = smov [#allocation6]  }
   0x2   :  { %s15_s10 = sshll.u32 %s246_s9, 4  ;;  %s25_s12 = sshll.u32 %s247_s11, 4  ;;  %s16_s10 = int_to_ptr.vmem [resolvable:$true] %s15_s10  ;;  %s26_s12 = int_to_ptr.vmem [resolvable:$true] %s25_s12 }
   0x3   :  { %s198_s15 = scalar_lea.hbm %s296_s0, 64 }
   0x4   :  { %p199_p0 = scmp.ne.s32.totalorder %s296_s0, %s198_s15  ;;  %p202_p1 = scmp.lt.u32.totalorder %s198_s15, %s296_s0 }
   0x6   :  { %p204_p2 = pnand %p202_p1, %p199_p0 }
   0x8   :  { %207 = shalt.err (!%p204_p2)
}
   0x9   :  { %s208_s20 = scalar_lea.vmem %s16_s10, 64  ;;  %p213_p4 = scmp.lt.s32.totalorder %s16_s10, %s16_s10 }
   0xa   :  { %p209_p3 = scmp.ne.s32.totalorder %s16_s10, %s208_s20  ;;  %p214_p5 = scmp.lt.s32.totalorder %s208_s20, %s208_s20 }
   0xc   :  { %p215_p6 = por %p214_p5, %p213_p4 }
   0xe   :  { %p216_p7 = pnand %p215_p6, %p209_p3 }
  0x10   :  { %219 = shalt.err (!%p216_p7)
}
  0x11   :  { %18 = dma.hbm_to_vmem [thread:$0]  %s296_s0, 64, %s16_s10, [#allocation5]  }
  0x12   :  { %s220_s25 = scalar_lea.hbm %s297_s1, 64 }
  0x13   :  { %p221_p8 = scmp.ne.s32.totalorder %s297_s1, %s220_s25  ;;  %p224_p9 = scmp.lt.u32.totalorder %s220_s25, %s297_s1 }
  0x15   :  { %p226_p10 = pnand %p224_p9, %p221_p8 }
  0x17   :  { %229 = shalt.err (!%p226_p10)
}
  0x18   :  { %s230_s30 = scalar_lea.vmem %s26_s12, 64  ;;  %p235_p12 = scmp.lt.s32.totalorder %s26_s12, %s26_s12 }
  0x19   :  { %p231_p11 = scmp.ne.s32.totalorder %s26_s12, %s230_s30  ;;  %p236_p13 = scmp.lt.s32.totalorder %s230_s30, %s230_s30 }
  0x1b   :  { %p237_p0 = por %p236_p13, %p235_p12 }
  0x1d   :  { %p238_p1 = pnand %p237_p0, %p231_p11 }
  0x1f   :  { %241 = shalt.err (!%p238_p1)
}
  0x20   :  { %28 = dma.hbm_to_vmem [thread:$0]  %s297_s1, 64, %s26_s12, [#allocation7]  }
  0x21   :  { %242 = dma.done.wait [#allocation5], 64  }
  0x22   :  { %243 = vsyncadd [#allocation5], 4294967232 }
  0x23   :  { %244 = dma.done.wait [#allocation7], 64  }
  0x24   :  { %245 = vsyncadd [#allocation7], 4294967232  ;;  %v50_v0 = vlaneseq  ;;  %vm39_vm0 = vcmask 9216   ;;  %v248_v1 = vmov 1983009808   ;;  %v249_v3 = vmov 0.0  }
  0x25   :  { %v48_v2 = vunpack.c.l.s4 %v248_v1  ;;  %40 = vst.msk [vmem:[#allocation2] sm:$0x3] %vm39_vm0, %v249_v3  ;;  %v44_v7 = vld [vmem:[#allocation6] sm:$0xf]  ;;  %v43_v8 = vld [vmem:[#allocation4] sm:$0xf] }
  0x26   :  { %v51_v4 = vshrl.u32 %v50_v0, 7  ;;  %v142_v11 = vmul.f32 %v44_v7, %v43_v8  ;;  %vm154_vm1 = vcmask 1041408   ;;  %vm41_vm2 = vcmask 1024  }
  0x27   :  { %v49_v5 = vunpack.c.0.s8 %v48_v2  ;;  %42 = vst.msk [vmem:[#allocation3] sm:$0x3] %vm41_vm2, %v249_v3 }
  0x29   :  { %v52_v6 = vsub.s32 %v49_v5, %v51_v4 }
  0x2b   :  { %v64_v9 = vrot.slane %v44_v7, %v52_v6  ;;  %v53_v10 = vrot.slane %v43_v8, %v52_v6  ;;  %v150_v21 = vrot.slane %v142_v11, %v52_v6 }
  0x2c   :  { %v45_v14 = vld [vmem:[#allocation2] sm:$0x3] }
  0x2d   :  { %v65_v12 = vcombine.high %v64_v9, %v64_v9  ;;  %v54_v13 = vcombine.high %v53_v10, %v53_v10  ;;  %v151_v22 = vcombine.high %v150_v21, %v150_v21  ;;  %v155_v23 = vsel %vm154_vm1, %v150_v21, 0.0 }
  0x2e   :  { %v141_v32 = vld [vmem:[#allocation3] sm:$0x3] }
  0x2f   :  { %68 = vmatprep.subr.mxu0 %v65_v12  ;;  %132 = vmatprep.mubr.f32.mxu0 %v54_v13  ;;  %v156_v24 = vsel %vm154_vm1, %v151_v22, 0.0 }
  0x30   :  { %69 = vmatpush1.xpose.msra.mxu0 %v64_v9  ;;  %v157_v25 = vadd.f32 %v156_v24, %v155_v23 }
  0x32   :  { %158 = vadd.xlane.f32.xlu1 %v157_v25 }
  0x33   :  { %133 = vmatmul.mubr.f32.vlgmr.msra.gmra.mrb[0].mxu0 %v53_v10 }
  0xbf   :  { %v159_v31 = vpop.xlane.xlu1 %158 }
  0xc0   :  { %v160_v33 = vadd.f32 %v159_v31, %v141_v32 }
  0xc2   :  { %162 = vst.msk [vmem:[#allocation3] sm:$0x3] %vm41_vm2, %v160_v33 }
  0xc9   :  { %v180_v35 = vld [vmem:[#allocation3] sm:$0x3] }
  0xca   :  { %v181_v38 = vmul.f32 2.0, %v180_v35 }
 0x106   :  { %v134_v15 = vpop.f32.mrb[0].mxu0 }
 0x107   :  { %v138_v16 = vadd.f32 %v134_v15, %v45_v14  ;;  %v136_v17 = vpop.f32.mrb[1].mxu0 }
 0x109   :  { %140 = vst.msk [vmem:[#allocation2] sm:$0x3] %vm39_vm0, %v138_v16 }
 0x110   :  { %v166_v18 = vld [vmem:[#allocation2] sm:$0x3] }
 0x111   :  { %v167_v19 = vmul.f32 2.0, %v166_v18 }
 0x113   :  { %v168_v20 = vsel %vm39_vm0, %v167_v19, -inf }
 0x114   :  { %169 = vmax.xlane.f32.xlu0 %v168_v20 }
 0x1a1   :  { %v170_v26 = vpop.xlane.xlu0 %169 }
 0x1a2   :  { %v171_v27 = vsub.f32 %v167_v19, %v170_v26 }
 0x1a4   :  { %v172_v28 = vmul.f32 1.442695, %v171_v27 }
 0x1a6   :  { %194 = vpow2.f32 %v172_v28 }
 0x1b0   :  { %v195_v29 = vpop.eup %194 }
 0x1b1   :  { %v174_v30 = vsel %vm39_vm0, %v195_v29, 0.0 }
 0x1b2   :  { %175 = vadd.xlane.f32.xlu0 %v174_v30 }
 0x23f   :  { %v176_v34 = vpop.xlane.xlu0 %175 }
 0x240   :  { %196 = vlog2.f32 %v176_v34 }
 0x24a   :  { %v197_v36 = vpop.eup %196 }
 0x24b   :  { %v178_v37 = vmul.f32 0.6931472, %v197_v36 }
 0x24d   :  { %v179_v39 = vadd.f32 %v178_v37, %v170_v26 }
 0x24f   :  { %v182_v40 = vsub.f32 %v179_v39, %v181_v38 }
 0x251   :  { %183 = vst.msk [vmem:[%s298_s2] sm:$0x3] %vm41_vm2, %v182_v40 }
 0x252   :  { %188 = vsyncpa [#allocation5], 1 }
 0x253   :  { %189 = vsyncpa [#allocation7], 1 }

</bundles_post_ra>
